<compile_context>
chip_gen: v5e
topology: v5e:2x2
jax: 0.10.0
libtpu: 0.0.40
codegen_flags: <defaults>
</compile_context>

<pallas_src>
import functools
import math

import jax
import jax.numpy as jnp
from jax.experimental import pallas as pl
from jax.experimental.pallas import tpu as pltpu

FEATURES = 4   # ['Price', 'Open', 'High', 'Low']
HIDDEN = 64


# ----------------------------- Pallas kernel -------------------------------

def bilstm_kernel(x_ref, w_in_ref, b_in_ref, whh_ref,
                  wfc_f_ref, wfc_b_ref, bfc_ref,
                  o_ref, xproj_ref, *, seq_len, batch):
    """x_ref: (T*BP, F) time-major flattened (row t*BP + b is x[b, t, :]).

    Gate columns of every matrix/bias are pre-ordered (i, f, o, g) and the
    i/f/o columns are pre-scaled by 0.5 so sigmoid(z) == 0.5*tanh(pre) + 0.5.
    w_in_ref: (F, 8H) = [forward 4H | backward 4H]; b_in_ref: (1, 8H).
    """
    H = whh_ref.shape[0]
    G = 4 * H

    # ---- hoisted input projection (both directions) + bias: one matmul ----
    xproj_ref[...] = (
        jnp.dot(x_ref[...], w_in_ref[...], preferred_element_type=jnp.float32)
        + b_in_ref[...])                                        # (T*BP, 8H)

    # Lane mask selecting the sigmoid-style (i|f|o) columns of a 4H gate tile.
    ifo = jax.lax.broadcasted_iota(jnp.int32, (batch, G), 1) < 3 * H

    def act(pre):                       # one aligned tanh + one VPU select
        y = jnp.tanh(pre)
        return jnp.where(ifo, 0.5 * y + 0.5, y)

    # ---- backward direction output at time T-1: one step from the zero
    #      state (h @ W_hh and f * c vanish). Runs as filler before step 0. ----
    a_b = act(xproj_ref[pl.ds((seq_len - 1) * batch, batch), pl.ds(G, G)])
    h_bwd = a_b[:, 2 * H:3 * H] * jnp.tanh(a_b[:, :H] * a_b[:, 3 * H:])

    # ---- forward direction: serial recurrence, fully unrolled (T is small) ----
    h = jnp.zeros((batch, H), jnp.float32)
    c = jnp.zeros((batch, H), jnp.float32)
    for t in range(seq_len):            # static slice starts, aligned tiles
        pre = (xproj_ref[pl.ds(t * batch, batch), pl.ds(0, G)]
               + jnp.dot(h, whh_ref[...], preferred_element_type=jnp.float32))
        a = act(pre)
        c = a[:, H:2 * H] * c + a[:, :H] * a[:, 3 * H:]     # f*c + i*g
        h = a[:, 2 * H:3 * H] * jnp.tanh(c)                 # o*tanh(c)

    # Dropout(0.3) is identity at inference time.
    # ---- fc: Linear(2H -> 1) as VPU multiply + lane (XLU) reduction ----
    o_ref[...] = (jnp.sum(h * wfc_f_ref[...], axis=-1, keepdims=True)
                  + jnp.sum(h_bwd * wfc_b_ref[...], axis=-1, keepdims=True)
                  + bfc_ref[...])                               # (BP, 1)


def bilstm_forward(x, kp):
    """x: (B, T, F) float32, batch_first like PyTorch."""
    B, T, F = x.shape
    H = HIDDEN
    BP = ((B + 7) // 8) * 8             # pad batch to the 8-sublane tile
    x_pad = jnp.zeros((BP, T, F), jnp.float32).at[:B].set(x.astype(jnp.float32))
    # time-major then flatten: row t*BP + b holds x[b, t, :].
    x2d = jnp.transpose(x_pad, (1, 0, 2)).reshape(T * BP, F)

    args = (x2d, kp["w_in"], kp["b_in"], kp["whh_f_t"],
            kp["wfc_f"], kp["wfc_b"], kp["bfc"])
    vmem = pl.BlockSpec(memory_space=pltpu.MemorySpace.VMEM)
    kernel = functools.partial(bilstm_kernel, seq_len=T, batch=BP)
    out = pl.pallas_call(
        kernel,
        out_shape=jax.ShapeDtypeStruct((BP, 1), jnp.float32),
        in_specs=[vmem] * len(args),
        out_specs=vmem,
        scratch_shapes=[pltpu.VMEM((T * BP, 8 * H), jnp.float32)],
    )(*args)
    return out[:B]


# ------------------------ deterministic parameter init ----------------------

def init_params(key):
    """PyTorch-style U(-1/sqrt(H), 1/sqrt(H)) init.

    Kernel weights are pre-transposed, gate-reordered (i,f,g,o) -> (i,f,o,g),
    and the i/f/o gate rows are pre-scaled by 0.5 (sigmoid -> tanh folding).
    """
    bound = 1.0 / math.sqrt(HIDDEN)
    keys = jax.random.split(key, 10)
    H = HIDDEN

    def u(kk, shape):
        return jax.random.uniform(kk, shape, jnp.float32, -bound, bound)

    raw = dict(
        wih_f=u(keys[0], (4 * H, FEATURES)),
        whh_f=u(keys[1], (4 * H, H)),
        bih_f=u(keys[2], (4 * H,)),
        bhh_f=u(keys[3], (4 * H,)),
        wih_b=u(keys[4], (4 * H, FEATURES)),
        whh_b=u(keys[5], (4 * H, H)),
        bih_b=u(keys[6], (4 * H,)),
        bhh_b=u(keys[7], (4 * H,)),
        wfc=u(keys[8], (1, 2 * H)),
        bfc=u(keys[9], (1,)),
    )

    # PyTorch gate row blocks are (i, f, g, o); reorder to (i, f, o, g) so the
    # kernel's sigmoid-style gates occupy the first 3H columns.
    perm = jnp.concatenate([jnp.arange(0, H), jnp.arange(H, 2 * H),
                            jnp.arange(3 * H, 4 * H), jnp.arange(2 * H, 3 * H)])
    # 0.5 pre-scale of everything feeding i/f/o: sigmoid(z) = 0.5*tanh(z/2)+0.5.
    scale = jnp.concatenate([jnp.full((3 * H,), 0.5, jnp.float32),
                             jnp.ones((H,), jnp.float32)])

    def prep_w(w):               # (4H, K) -> (K, 4H), reordered + scaled
        return (w[perm] * scale[:, None]).T

    def prep_b(b):               # (4H,)  -> (1, 4H), reordered + scaled
        return (b[perm] * scale)[None, :]

    wih_f_t = prep_w(raw["wih_f"])                        # (F, 4H)
    wih_b_t = prep_w(raw["wih_b"])                        # (F, 4H)
    b_f = prep_b(raw["bih_f"] + raw["bhh_f"])             # (1, 4H)
    b_b = prep_b(raw["bih_b"] + raw["bhh_b"])             # (1, 4H)

    kp = dict(
        w_in=jnp.concatenate([wih_f_t, wih_b_t], axis=1),   # (F, 8H)
        b_in=jnp.concatenate([b_f, b_b], axis=1),           # (1, 8H)
        whh_f_t=prep_w(raw["whh_f"]),                        # (H, 4H)
        wfc_f=raw["wfc"][:, :H],                             # (1, H) fwd half
        wfc_b=raw["wfc"][:, H:],                             # (1, H) bwd half
        bfc=raw["bfc"][None, :],                             # (1, 1)
    )
    return raw, kp


# ------------------------------ pure-JAX reference --------------------------

def ref_forward(x, raw):
    """Full bidirectional LSTM (all time steps) + last-step slice + fc."""
    B, T, F = x.shape
    H = HIDDEN

    def cell(xt, h, c, wih, whh, bih, bhh):
        gates = xt @ wih.T + h @ whh.T + bih + bhh
        i, f, g, o = jnp.split(gates, 4, axis=-1)
        i = jax.nn.sigmoid(i); f = jax.nn.sigmoid(f)
        g = jnp.tanh(g); o = jax.nn.sigmoid(o)
        c = f * c + i * g
        return o * jnp.tanh(c), c

    h = jnp.zeros((B, H)); c = jnp.zeros((B, H))
    fwd = []
    for t in range(T):
        h, c = cell(x[:, t], h, c, raw["wih_f"], raw["whh_f"],
                    raw["bih_f"], raw["bhh_f"])
        fwd.append(h)
    h = jnp.zeros((B, H)); c = jnp.zeros((B, H))
    bwd = [None] * T
    for t in range(T - 1, -1, -1):
        h, c = cell(x[:, t], h, c, raw["wih_b"], raw["whh_b"],
                    raw["bih_b"], raw["bhh_b"])
        bwd[t] = h
    last = jnp.concatenate([fwd[-1], bwd[-1]], axis=-1)   # out[:, -1, :]
    return last @ raw["wfc"].T + raw["bfc"]


# ---------------------------------- main ------------------------------------

if __name__ == "__main__":
    key = jax.random.PRNGKey(0)
    k_param, k_x = jax.random.split(key)

    B, T = 2, 8
    x = jax.random.normal(k_x, (B, T, FEATURES), dtype=jnp.float32)

    raw, kp = init_params(k_param)

    out = bilstm_forward(x, kp)
    out = jax.block_until_ready(out)

    expected = ref_forward(x, raw)
    assert out.shape == (B, 1), out.shape
    assert jnp.allclose(out, expected, atol=2e-5, rtol=1e-5), (out, expected)

    print("KERNEL_OK")
</pallas_src>

<mosaic_0001>
module attributes {stable_mosaic.version = 11 : i64} {
  func.func @bilstm_kernel(%arg0: memref<64x4xf32, #tpu.memory_space<vmem>>, %arg1: memref<4x512xf32, #tpu.memory_space<vmem>>, %arg2: memref<1x512xf32, #tpu.memory_space<vmem>>, %arg3: memref<64x256xf32, #tpu.memory_space<vmem>>, %arg4: memref<1x64xf32, #tpu.memory_space<vmem>>, %arg5: memref<1x64xf32, #tpu.memory_space<vmem>>, %arg6: memref<1x1xf32, #tpu.memory_space<vmem>>, %arg7: memref<8x1xf32, #tpu.memory_space<vmem>>, %arg8: memref<64x512xf32, #tpu.memory_space<vmem>>) attributes {dimension_semantics = [], scalar_prefetch = 0 : i64, scratch_operands = 1 : i64, tpu.core_type = #tpu.core_type<tc>} {
    %c0 = arith.constant 0 : index
    %c0_0 = arith.constant 0 : index
    %0 = vector.load %arg0[%c0, %c0_0] : memref<64x4xf32, #tpu.memory_space<vmem>>, vector<64x4xf32>
    %c0_1 = arith.constant 0 : index
    %c0_2 = arith.constant 0 : index
    %1 = vector.load %arg1[%c0_1, %c0_2] : memref<4x512xf32, #tpu.memory_space<vmem>>, vector<4x512xf32>
    %cst = arith.constant dense<0.000000e+00> : vector<64x512xf32>
    %2 = tpu.matmul %0, %1, %cst {dimension_numbers = #tpu.dot_dimension_numbers<[1], [0], [0], [1], [0, 0, 1, 1], [], []>} : vector<64x4xf32>, vector<4x512xf32>, vector<64x512xf32> -> vector<64x512xf32>
    %c0_3 = arith.constant 0 : index
    %c0_4 = arith.constant 0 : index
    %3 = vector.load %arg2[%c0_3, %c0_4] : memref<1x512xf32, #tpu.memory_space<vmem>>, vector<1x512xf32>
    %4 = vector.broadcast %3 : vector<1x512xf32> to vector<64x512xf32>
    %5 = arith.addf %2, %4 : vector<64x512xf32>
    %c0_5 = arith.constant 0 : index
    %c0_6 = arith.constant 0 : index
    %6 = vector.load %arg8[%c0_5, %c0_6] : memref<64x512xf32, #tpu.memory_space<vmem>>, vector<64x512xf32>
    tpu.vector_store %arg8[%c0_5, %c0_6], %5 {strides = array<i32>} : memref<64x512xf32, #tpu.memory_space<vmem>>, vector<64x512xf32>,
    %7 = tpu.iota {dimensions = array<i32: 1>} : vector<8x256xi32>
    %c192_i32 = arith.constant 192 : i32
    %8 = vector.broadcast %c192_i32 : i32 to vector<8x256xi32>
    %9 = arith.cmpi slt, %7, %8 : vector<8x256xi32>
    %c56 = arith.constant 56 : index
    %c256 = arith.constant 256 : index
    %10 = vector.load %arg8[%c56, %c256] : memref<64x512xf32, #tpu.memory_space<vmem>>, vector<8x256xf32>
    %11 = math.tanh %10 : vector<8x256xf32>
    %cst_7 = arith.constant 5.000000e-01 : f32
    %12 = vector.broadcast %cst_7 : f32 to vector<8x256xf32>
    %13 = arith.mulf %12, %11 : vector<8x256xf32>
    %cst_8 = arith.constant 5.000000e-01 : f32
    %14 = vector.broadcast %cst_8 : f32 to vector<8x256xf32>
    %15 = arith.addf %13, %14 : vector<8x256xf32>
    %16 = arith.select %9, %15, %11 : vector<8x256xi1>, vector<8x256xf32>
    %17 = vector.extract_strided_slice %16 {offsets = [0, 128], sizes = [8, 64], strides = [1, 1]} : vector<8x256xf32> to vector<8x64xf32>
    %18 = vector.extract_strided_slice %16 {offsets = [0, 0], sizes = [8, 64], strides = [1, 1]} : vector<8x256xf32> to vector<8x64xf32>
    %19 = vector.extract_strided_slice %16 {offsets = [0, 192], sizes = [8, 64], strides = [1, 1]} : vector<8x256xf32> to vector<8x64xf32>
    %20 = arith.mulf %18, %19 : vector<8x64xf32>
    %21 = math.tanh %20 : vector<8x64xf32>
    %22 = arith.mulf %17, %21 : vector<8x64xf32>
    %cst_9 = arith.constant 0.000000e+00 : f32
    %23 = vector.broadcast %cst_9 : f32 to vector<8x64xf32>
    %cst_10 = arith.constant 0.000000e+00 : f32
    %24 = vector.broadcast %cst_10 : f32 to vector<8x64xf32>
    %c0_11 = arith.constant 0 : index
    %c0_12 = arith.constant 0 : index
    %25 = vector.load %arg8[%c0_11, %c0_12] : memref<64x512xf32, #tpu.memory_space<vmem>>, vector<8x256xf32>
    %c0_13 = arith.constant 0 : index
    %c0_14 = arith.constant 0 : index
    %26 = vector.load %arg3[%c0_13, %c0_14] : memref<64x256xf32, #tpu.memory_space<vmem>>, vector<64x256xf32>
    %cst_15 = arith.constant dense<0.000000e+00> : vector<8x256xf32>
    %27 = tpu.matmul %23, %26, %cst_15 {dimension_numbers = #tpu.dot_dimension_numbers<[1], [0], [0], [1], [0, 0, 1, 1], [], []>} : vector<8x64xf32>, vector<64x256xf32>, vector<8x256xf32> -> vector<8x256xf32>
    %28 = arith.addf %25, %27 : vector<8x256xf32>
    %29 = math.tanh %28 : vector<8x256xf32>
    %cst_16 = arith.constant 5.000000e-01 : f32
    %30 = vector.broadcast %cst_16 : f32 to vector<8x256xf32>
    %31 = arith.mulf %30, %29 : vector<8x256xf32>
    %cst_17 = arith.constant 5.000000e-01 : f32
    %32 = vector.broadcast %cst_17 : f32 to vector<8x256xf32>
    %33 = arith.addf %31, %32 : vector<8x256xf32>
    %34 = arith.select %9, %33, %29 : vector<8x256xi1>, vector<8x256xf32>
    %35 = vector.extract_strided_slice %34 {offsets = [0, 64], sizes = [8, 64], strides = [1, 1]} : vector<8x256xf32> to vector<8x64xf32>
    %36 = arith.mulf %35, %24 : vector<8x64xf32>
    %37 = vector.extract_strided_slice %34 {offsets = [0, 0], sizes = [8, 64], strides = [1, 1]} : vector<8x256xf32> to vector<8x64xf32>
    %38 = vector.extract_strided_slice %34 {offsets = [0, 192], sizes = [8, 64], strides = [1, 1]} : vector<8x256xf32> to vector<8x64xf32>
    %39 = arith.mulf %37, %38 : vector<8x64xf32>
    %40 = arith.addf %36, %39 : vector<8x64xf32>
    %41 = vector.extract_strided_slice %34 {offsets = [0, 128], sizes = [8, 64], strides = [1, 1]} : vector<8x256xf32> to vector<8x64xf32>
    %42 = math.tanh %40 : vector<8x64xf32>
    %43 = arith.mulf %41, %42 : vector<8x64xf32>
    %c8 = arith.constant 8 : index
    %c0_18 = arith.constant 0 : index
    %44 = vector.load %arg8[%c8, %c0_18] : memref<64x512xf32, #tpu.memory_space<vmem>>, vector<8x256xf32>
    %c0_19 = arith.constant 0 : index
    %c0_20 = arith.constant 0 : index
    %45 = vector.load %arg3[%c0_19, %c0_20] : memref<64x256xf32, #tpu.memory_space<vmem>>, vector<64x256xf32>
    %cst_21 = arith.constant dense<0.000000e+00> : vector<8x256xf32>
    %46 = tpu.matmul %43, %45, %cst_21 {dimension_numbers = #tpu.dot_dimension_numbers<[1], [0], [0], [1], [0, 0, 1, 1], [], []>} : vector<8x64xf32>, vector<64x256xf32>, vector<8x256xf32> -> vector<8x256xf32>
    %47 = arith.addf %44, %46 : vector<8x256xf32>
    %48 = math.tanh %47 : vector<8x256xf32>
    %cst_22 = arith.constant 5.000000e-01 : f32
    %49 = vector.broadcast %cst_22 : f32 to vector<8x256xf32>
    %50 = arith.mulf %49, %48 : vector<8x256xf32>
    %cst_23 = arith.constant 5.000000e-01 : f32
    %51 = vector.broadcast %cst_23 : f32 to vector<8x256xf32>
    %52 = arith.addf %50, %51 : vector<8x256xf32>
    %53 = arith.select %9, %52, %48 : vector<8x256xi1>, vector<8x256xf32>
    %54 = vector.extract_strided_slice %53 {offsets = [0, 64], sizes = [8, 64], strides = [1, 1]} : vector<8x256xf32> to vector<8x64xf32>
    %55 = arith.mulf %54, %40 : vector<8x64xf32>
    %56 = vector.extract_strided_slice %53 {offsets = [0, 0], sizes = [8, 64], strides = [1, 1]} : vector<8x256xf32> to vector<8x64xf32>
    %57 = vector.extract_strided_slice %53 {offsets = [0, 192], sizes = [8, 64], strides = [1, 1]} : vector<8x256xf32> to vector<8x64xf32>
    %58 = arith.mulf %56, %57 : vector<8x64xf32>
    %59 = arith.addf %55, %58 : vector<8x64xf32>
    %60 = vector.extract_strided_slice %53 {offsets = [0, 128], sizes = [8, 64], strides = [1, 1]} : vector<8x256xf32> to vector<8x64xf32>
    %61 = math.tanh %59 : vector<8x64xf32>
    %62 = arith.mulf %60, %61 : vector<8x64xf32>
    %c16 = arith.constant 16 : index
    %c0_24 = arith.constant 0 : index
    %63 = vector.load %arg8[%c16, %c0_24] : memref<64x512xf32, #tpu.memory_space<vmem>>, vector<8x256xf32>
    %c0_25 = arith.constant 0 : index
    %c0_26 = arith.constant 0 : index
    %64 = vector.load %arg3[%c0_25, %c0_26] : memref<64x256xf32, #tpu.memory_space<vmem>>, vector<64x256xf32>
    %cst_27 = arith.constant dense<0.000000e+00> : vector<8x256xf32>
    %65 = tpu.matmul %62, %64, %cst_27 {dimension_numbers = #tpu.dot_dimension_numbers<[1], [0], [0], [1], [0, 0, 1, 1], [], []>} : vector<8x64xf32>, vector<64x256xf32>, vector<8x256xf32> -> vector<8x256xf32>
    %66 = arith.addf %63, %65 : vector<8x256xf32>
    %67 = math.tanh %66 : vector<8x256xf32>
    %cst_28 = arith.constant 5.000000e-01 : f32
    %68 = vector.broadcast %cst_28 : f32 to vector<8x256xf32>
    %69 = arith.mulf %68, %67 : vector<8x256xf32>
    %cst_29 = arith.constant 5.000000e-01 : f32
    %70 = vector.broadcast %cst_29 : f32 to vector<8x256xf32>
    %71 = arith.addf %69, %70 : vector<8x256xf32>
    %72 = arith.select %9, %71, %67 : vector<8x256xi1>, vector<8x256xf32>
    %73 = vector.extract_strided_slice %72 {offsets = [0, 64], sizes = [8, 64], strides = [1, 1]} : vector<8x256xf32> to vector<8x64xf32>
    %74 = arith.mulf %73, %59 : vector<8x64xf32>
    %75 = vector.extract_strided_slice %72 {offsets = [0, 0], sizes = [8, 64], strides = [1, 1]} : vector<8x256xf32> to vector<8x64xf32>
    %76 = vector.extract_strided_slice %72 {offsets = [0, 192], sizes = [8, 64], strides = [1, 1]} : vector<8x256xf32> to vector<8x64xf32>
    %77 = arith.mulf %75, %76 : vector<8x64xf32>
    %78 = arith.addf %74, %77 : vector<8x64xf32>
    %79 = vector.extract_strided_slice %72 {offsets = [0, 128], sizes = [8, 64], strides = [1, 1]} : vector<8x256xf32> to vector<8x64xf32>
    %80 = math.tanh %78 : vector<8x64xf32>
    %81 = arith.mulf %79, %80 : vector<8x64xf32>
    %c24 = arith.constant 24 : index
    %c0_30 = arith.constant 0 : index
    %82 = vector.load %arg8[%c24, %c0_30] : memref<64x512xf32, #tpu.memory_space<vmem>>, vector<8x256xf32>
    %c0_31 = arith.constant 0 : index
    %c0_32 = arith.constant 0 : index
    %83 = vector.load %arg3[%c0_31, %c0_32] : memref<64x256xf32, #tpu.memory_space<vmem>>, vector<64x256xf32>
    %cst_33 = arith.constant dense<0.000000e+00> : vector<8x256xf32>
    %84 = tpu.matmul %81, %83, %cst_33 {dimension_numbers = #tpu.dot_dimension_numbers<[1], [0], [0], [1], [0, 0, 1, 1], [], []>} : vector<8x64xf32>, vector<64x256xf32>, vector<8x256xf32> -> vector<8x256xf32>
    %85 = arith.addf %82, %84 : vector<8x256xf32>
    %86 = math.tanh %85 : vector<8x256xf32>
    %cst_34 = arith.constant 5.000000e-01 : f32
    %87 = vector.broadcast %cst_34 : f32 to vector<8x256xf32>
    %88 = arith.mulf %87, %86 : vector<8x256xf32>
    %cst_35 = arith.constant 5.000000e-01 : f32
    %89 = vector.broadcast %cst_35 : f32 to vector<8x256xf32>
    %90 = arith.addf %88, %89 : vector<8x256xf32>
    %91 = arith.select %9, %90, %86 : vector<8x256xi1>, vector<8x256xf32>
    %92 = vector.extract_strided_slice %91 {offsets = [0, 64], sizes = [8, 64], strides = [1, 1]} : vector<8x256xf32> to vector<8x64xf32>
    %93 = arith.mulf %92, %78 : vector<8x64xf32>
    %94 = vector.extract_strided_slice %91 {offsets = [0, 0], sizes = [8, 64], strides = [1, 1]} : vector<8x256xf32> to vector<8x64xf32>
    %95 = vector.extract_strided_slice %91 {offsets = [0, 192], sizes = [8, 64], strides = [1, 1]} : vector<8x256xf32> to vector<8x64xf32>
    %96 = arith.mulf %94, %95 : vector<8x64xf32>
    %97 = arith.addf %93, %96 : vector<8x64xf32>
    %98 = vector.extract_strided_slice %91 {offsets = [0, 128], sizes = [8, 64], strides = [1, 1]} : vector<8x256xf32> to vector<8x64xf32>
    %99 = math.tanh %97 : vector<8x64xf32>
    %100 = arith.mulf %98, %99 : vector<8x64xf32>
    %c32 = arith.constant 32 : index
    %c0_36 = arith.constant 0 : index
    %101 = vector.load %arg8[%c32, %c0_36] : memref<64x512xf32, #tpu.memory_space<vmem>>, vector<8x256xf32>
    %c0_37 = arith.constant 0 : index
    %c0_38 = arith.constant 0 : index
    %102 = vector.load %arg3[%c0_37, %c0_38] : memref<64x256xf32, #tpu.memory_space<vmem>>, vector<64x256xf32>
    %cst_39 = arith.constant dense<0.000000e+00> : vector<8x256xf32>
    %103 = tpu.matmul %100, %102, %cst_39 {dimension_numbers = #tpu.dot_dimension_numbers<[1], [0], [0], [1], [0, 0, 1, 1], [], []>} : vector<8x64xf32>, vector<64x256xf32>, vector<8x256xf32> -> vector<8x256xf32>
    %104 = arith.addf %101, %103 : vector<8x256xf32>
    %105 = math.tanh %104 : vector<8x256xf32>
    %cst_40 = arith.constant 5.000000e-01 : f32
    %106 = vector.broadcast %cst_40 : f32 to vector<8x256xf32>
    %107 = arith.mulf %106, %105 : vector<8x256xf32>
    %cst_41 = arith.constant 5.000000e-01 : f32
    %108 = vector.broadcast %cst_41 : f32 to vector<8x256xf32>
    %109 = arith.addf %107, %108 : vector<8x256xf32>
    %110 = arith.select %9, %109, %105 : vector<8x256xi1>, vector<8x256xf32>
    %111 = vector.extract_strided_slice %110 {offsets = [0, 64], sizes = [8, 64], strides = [1, 1]} : vector<8x256xf32> to vector<8x64xf32>
    %112 = arith.mulf %111, %97 : vector<8x64xf32>
    %113 = vector.extract_strided_slice %110 {offsets = [0, 0], sizes = [8, 64], strides = [1, 1]} : vector<8x256xf32> to vector<8x64xf32>
    %114 = vector.extract_strided_slice %110 {offsets = [0, 192], sizes = [8, 64], strides = [1, 1]} : vector<8x256xf32> to vector<8x64xf32>
    %115 = arith.mulf %113, %114 : vector<8x64xf32>
    %116 = arith.addf %112, %115 : vector<8x64xf32>
    %117 = vector.extract_strided_slice %110 {offsets = [0, 128], sizes = [8, 64], strides = [1, 1]} : vector<8x256xf32> to vector<8x64xf32>
    %118 = math.tanh %116 : vector<8x64xf32>
    %119 = arith.mulf %117, %118 : vector<8x64xf32>
    %c40 = arith.constant 40 : index
    %c0_42 = arith.constant 0 : index
    %120 = vector.load %arg8[%c40, %c0_42] : memref<64x512xf32, #tpu.memory_space<vmem>>, vector<8x256xf32>
    %c0_43 = arith.constant 0 : index
    %c0_44 = arith.constant 0 : index
    %121 = vector.load %arg3[%c0_43, %c0_44] : memref<64x256xf32, #tpu.memory_space<vmem>>, vector<64x256xf32>
    %cst_45 = arith.constant dense<0.000000e+00> : vector<8x256xf32>
    %122 = tpu.matmul %119, %121, %cst_45 {dimension_numbers = #tpu.dot_dimension_numbers<[1], [0], [0], [1], [0, 0, 1, 1], [], []>} : vector<8x64xf32>, vector<64x256xf32>, vector<8x256xf32> -> vector<8x256xf32>
    %123 = arith.addf %120, %122 : vector<8x256xf32>
    %124 = math.tanh %123 : vector<8x256xf32>
    %cst_46 = arith.constant 5.000000e-01 : f32
    %125 = vector.broadcast %cst_46 : f32 to vector<8x256xf32>
    %126 = arith.mulf %125, %124 : vector<8x256xf32>
    %cst_47 = arith.constant 5.000000e-01 : f32
    %127 = vector.broadcast %cst_47 : f32 to vector<8x256xf32>
    %128 = arith.addf %126, %127 : vector<8x256xf32>
    %129 = arith.select %9, %128, %124 : vector<8x256xi1>, vector<8x256xf32>
    %130 = vector.extract_strided_slice %129 {offsets = [0, 64], sizes = [8, 64], strides = [1, 1]} : vector<8x256xf32> to vector<8x64xf32>
    %131 = arith.mulf %130, %116 : vector<8x64xf32>
    %132 = vector.extract_strided_slice %129 {offsets = [0, 0], sizes = [8, 64], strides = [1, 1]} : vector<8x256xf32> to vector<8x64xf32>
    %133 = vector.extract_strided_slice %129 {offsets = [0, 192], sizes = [8, 64], strides = [1, 1]} : vector<8x256xf32> to vector<8x64xf32>
    %134 = arith.mulf %132, %133 : vector<8x64xf32>
    %135 = arith.addf %131, %134 : vector<8x64xf32>
    %136 = vector.extract_strided_slice %129 {offsets = [0, 128], sizes = [8, 64], strides = [1, 1]} : vector<8x256xf32> to vector<8x64xf32>
    %137 = math.tanh %135 : vector<8x64xf32>
    %138 = arith.mulf %136, %137 : vector<8x64xf32>
    %c48 = arith.constant 48 : index
    %c0_48 = arith.constant 0 : index
    %139 = vector.load %arg8[%c48, %c0_48] : memref<64x512xf32, #tpu.memory_space<vmem>>, vector<8x256xf32>
    %c0_49 = arith.constant 0 : index
    %c0_50 = arith.constant 0 : index
    %140 = vector.load %arg3[%c0_49, %c0_50] : memref<64x256xf32, #tpu.memory_space<vmem>>, vector<64x256xf32>
    %cst_51 = arith.constant dense<0.000000e+00> : vector<8x256xf32>
    %141 = tpu.matmul %138, %140, %cst_51 {dimension_numbers = #tpu.dot_dimension_numbers<[1], [0], [0], [1], [0, 0, 1, 1], [], []>} : vector<8x64xf32>, vector<64x256xf32>, vector<8x256xf32> -> vector<8x256xf32>
    %142 = arith.addf %139, %141 : vector<8x256xf32>
    %143 = math.tanh %142 : vector<8x256xf32>
    %cst_52 = arith.constant 5.000000e-01 : f32
    %144 = vector.broadcast %cst_52 : f32 to vector<8x256xf32>
    %145 = arith.mulf %144, %143 : vector<8x256xf32>
    %cst_53 = arith.constant 5.000000e-01 : f32
    %146 = vector.broadcast %cst_53 : f32 to vector<8x256xf32>
    %147 = arith.addf %145, %146 : vector<8x256xf32>
    %148 = arith.select %9, %147, %143 : vector<8x256xi1>, vector<8x256xf32>
    %149 = vector.extract_strided_slice %148 {offsets = [0, 64], sizes = [8, 64], strides = [1, 1]} : vector<8x256xf32> to vector<8x64xf32>
    %150 = arith.mulf %149, %135 : vector<8x64xf32>
    %151 = vector.extract_strided_slice %148 {offsets = [0, 0], sizes = [8, 64], strides = [1, 1]} : vector<8x256xf32> to vector<8x64xf32>
    %152 = vector.extract_strided_slice %148 {offsets = [0, 192], sizes = [8, 64], strides = [1, 1]} : vector<8x256xf32> to vector<8x64xf32>
    %153 = arith.mulf %151, %152 : vector<8x64xf32>
    %154 = arith.addf %150, %153 : vector<8x64xf32>
    %155 = vector.extract_strided_slice %148 {offsets = [0, 128], sizes = [8, 64], strides = [1, 1]} : vector<8x256xf32> to vector<8x64xf32>
    %156 = math.tanh %154 : vector<8x64xf32>
    %157 = arith.mulf %155, %156 : vector<8x64xf32>
    %c56_54 = arith.constant 56 : index
    %c0_55 = arith.constant 0 : index
    %158 = vector.load %arg8[%c56_54, %c0_55] : memref<64x512xf32, #tpu.memory_space<vmem>>, vector<8x256xf32>
    %c0_56 = arith.constant 0 : index
    %c0_57 = arith.constant 0 : index
    %159 = vector.load %arg3[%c0_56, %c0_57] : memref<64x256xf32, #tpu.memory_space<vmem>>, vector<64x256xf32>
    %cst_58 = arith.constant dense<0.000000e+00> : vector<8x256xf32>
    %160 = tpu.matmul %157, %159, %cst_58 {dimension_numbers = #tpu.dot_dimension_numbers<[1], [0], [0], [1], [0, 0, 1, 1], [], []>} : vector<8x64xf32>, vector<64x256xf32>, vector<8x256xf32> -> vector<8x256xf32>
    %161 = arith.addf %158, %160 : vector<8x256xf32>
    %162 = math.tanh %161 : vector<8x256xf32>
    %cst_59 = arith.constant 5.000000e-01 : f32
    %163 = vector.broadcast %cst_59 : f32 to vector<8x256xf32>
    %164 = arith.mulf %163, %162 : vector<8x256xf32>
    %cst_60 = arith.constant 5.000000e-01 : f32
    %165 = vector.broadcast %cst_60 : f32 to vector<8x256xf32>
    %166 = arith.addf %164, %165 : vector<8x256xf32>
    %167 = arith.select %9, %166, %162 : vector<8x256xi1>, vector<8x256xf32>
    %168 = vector.extract_strided_slice %167 {offsets = [0, 64], sizes = [8, 64], strides = [1, 1]} : vector<8x256xf32> to vector<8x64xf32>
    %169 = arith.mulf %168, %154 : vector<8x64xf32>
    %170 = vector.extract_strided_slice %167 {offsets = [0, 0], sizes = [8, 64], strides = [1, 1]} : vector<8x256xf32> to vector<8x64xf32>
    %171 = vector.extract_strided_slice %167 {offsets = [0, 192], sizes = [8, 64], strides = [1, 1]} : vector<8x256xf32> to vector<8x64xf32>
    %172 = arith.mulf %170, %171 : vector<8x64xf32>
    %173 = arith.addf %169, %172 : vector<8x64xf32>
    %174 = vector.extract_strided_slice %167 {offsets = [0, 128], sizes = [8, 64], strides = [1, 1]} : vector<8x256xf32> to vector<8x64xf32>
    %175 = math.tanh %173 : vector<8x64xf32>
    %176 = arith.mulf %174, %175 : vector<8x64xf32>
    %c0_61 = arith.constant 0 : index
    %c0_62 = arith.constant 0 : index
    %177 = vector.load %arg4[%c0_61, %c0_62] : memref<1x64xf32, #tpu.memory_space<vmem>>, vector<1x64xf32>
    %178 = vector.broadcast %177 : vector<1x64xf32> to vector<8x64xf32>
    %179 = arith.mulf %176, %178 : vector<8x64xf32>
    %cst_63 = arith.constant dense<0.000000e+00> : vector<8xf32>
    %180 = vector.multi_reduction <add>, %179, %cst_63 [1] : vector<8x64xf32> to vector<8xf32>
    %181 = vector.shape_cast %180 : vector<8xf32> to vector<8x1xf32>
    %c0_64 = arith.constant 0 : index
    %c0_65 = arith.constant 0 : index
    %182 = vector.load %arg5[%c0_64, %c0_65] : memref<1x64xf32, #tpu.memory_space<vmem>>, vector<1x64xf32>
    %183 = vector.broadcast %182 : vector<1x64xf32> to vector<8x64xf32>
    %184 = arith.mulf %22, %183 : vector<8x64xf32>
    %cst_66 = arith.constant dense<0.000000e+00> : vector<8xf32>
    %185 = vector.multi_reduction <add>, %184, %cst_66 [1] : vector<8x64xf32> to vector<8xf32>
    %186 = vector.shape_cast %185 : vector<8xf32> to vector<8x1xf32>
    %187 = arith.addf %181, %186 : vector<8x1xf32>
    %c0_67 = arith.constant 0 : index
    %c0_68 = arith.constant 0 : index
    %188 = vector.load %arg6[%c0_67, %c0_68] : memref<1x1xf32, #tpu.memory_space<vmem>>, vector<1x1xf32>
    %189 = vector.broadcast %188 : vector<1x1xf32> to vector<8x1xf32>
    %190 = arith.addf %187, %189 : vector<8x1xf32>
    %c0_69 = arith.constant 0 : index
    %c0_70 = arith.constant 0 : index
    %191 = vector.load %arg7[%c0_69, %c0_70] : memref<8x1xf32, #tpu.memory_space<vmem>>, vector<8x1xf32>
    tpu.vector_store %arg7[%c0_69, %c0_70], %190 {strides = array<i32>} : memref<8x1xf32, #tpu.memory_space<vmem>>, vector<8x1xf32>,
    return
  }
}

</mosaic_0001>

<bundles_post_ra>
// kernel: tpu_custom_call.1
= control target key start
LH: loop header
LB: loop body
LE: loop exit
PB: predicated region body
PF: predicated region fallthrough
CT: control target
= control target key end

     0   :  { %s1546_s0 = inlined_call_operand.vmem [shape: f32[64,4], index: 0, kind: input, shape index: {}]   ;;  %s1547_s1 = inlined_call_operand.vmem [shape: f32[4,512], index: 1, kind: input, shape index: {}]   ;;  %s1548_s2 = inlined_call_operand.vmem [shape: f32[1,512], index: 2, kind: input, shape index: {}]   ;;  %s1549_s3 = inlined_call_operand.hbm [shape: f32[64,256], index: 3, kind: input, shape index: {}]   ;;  %s1550_s4 = inlined_call_operand.vmem [shape: f32[1,64], index: 4, kind: input, shape index: {}]   ;;  %s1551_s5 = inlined_call_operand.vmem [shape: f32[1,64], index: 5, kind: input, shape index: {}]   ;;  %s1552_s6 = inlined_call_operand.<no memory space> [shape: f32[1,1], index: 6, kind: input, shape index: {}]   ;;  %s1553_s7 = inlined_call_operand.vmem [shape: f32[8,1], index: 7, kind: output, shape index: {}]  }
   0x1   :  { %v12_v0 = vstv %s1552_s6 }
   0x2   :  { %13 = vst [vmem:[#allocation3] sm:$0x1] %v12_v0 }
   0x3   :  { %14 = vsyncpa [#allocation5], 0  ;;  %s25_s28 = sshll.u32 %s1549_s3, 4  ;;  %s1085_s29 = smov [#allocation4]   ;;  %s26_s28 = int_to_ptr.hbm [resolvable:$true] %s25_s28 }
   0x4   :  { %s27_s30 = sshll.u32 %s1085_s29, 4  ;;  %s1086_s8 = smov 256   ;;  %s28_s30 = int_to_ptr.vmem [resolvable:$true] %s27_s30 }
   0x5   :  { %s1087_s9 = smov 16  }
   0x6   :  { %33 = dma.hbm_to_vmem [thread:$0]  %s26_s28, 2048, %s28_s30, [#allocation5], %s1086_s8, %s1086_s8, %s1087_s9  }
   0x7   :  { %1083 = dma.done.wait [#allocation5], 2048  }
   0x8   :  { %1084 = vsyncadd [#allocation5], 4294965248  ;;  %v52_v1 = vld [vmem:[%s1547_s1] sm:$0xff]  ;;  %vm98_vm0 = vcmask 1043456   ;;  %vm73_vm1 = vcmask 31744   ;;  %v1149_v5 = vld [vmem:[#allocation4 + $0x68] sm:$0xff]  ;;  %v303_v59 = vlaneseq }
   0x9   :  { %66 = vst [vmem:[#allocation1] ss:$2 sm:$0xff] %v52_v1  ;;  %v1142_v2 = vld [vmem:[%s1546_s0] sm:$0xff]  ;;  %v1155_v7 = vld [vmem:[#allocation4 + $0x48] sm:$0xff]  ;;  %v1160_v8 = vld [vmem:[%s1546_s0 + $0x8] sm:$0xff]  ;;  %v1088_v28 = vmov 0.0  }
   0xa   :  { %v1144_v4 = vld [vmem:[#allocation4 + $0x78] sm:$0xff]  ;;  %v1168_v10 = vld [vmem:[#allocation4 + $0x28] sm:$0xff]  ;;  %v1210_v17 = vld [vmem:[#allocation4 + $0x70] sm:$0xff]  ;;  %v304_v62 = vand.u32 127, %v303_v59  ;;  %vm343_vm3 = vcmask 523264   ;;  %vm940_vm4 = vcmask 7168  }
   0xb   :  { %v1152_v6 = vld [vmem:[#allocation4 + $0x58] sm:$0xff]  ;;  %v1175_v11 = vld [vmem:[%s1546_s0 + $0x10] sm:$0xff]  ;;  %v1188_v14 = vld [vmem:[%s1546_s0 + $0x18] sm:$0xff] }
   0xc   :  { %v1163_v9 = vld [vmem:[#allocation4 + $0x38] sm:$0xff]  ;;  %v1192_v15 = vld [vmem:[#allocation4 + $0x8] sm:$0xff]  ;;  %v1212_v18 = vld [vmem:[#allocation4 + $0x60] sm:$0xff]  ;;  %v1326_v1 = vadd.s32 128, %v304_v62 }
   0xd   :  { %v1179_v12 = vld [vmem:[#allocation4 + $0x18] sm:$0xff]  ;;  %v1216_v19 = vld [vmem:[#allocation4 + $0x50] sm:$0xff]  ;;  %v1225_v21 = vld [vmem:[#allocation4 + $0x40] sm:$0xff] }
   0xe   :  { %v1202_v16 = vld [vmem:[%s1546_s0 + $0x20] sm:$0xff]  ;;  %v1221_v20 = vld [vmem:[%s1546_s0 + $0x28] sm:$0xff]  ;;  %v1245_v25 = vld [vmem:[%s1546_s0 + $0x30] sm:$0xff]  ;;  %vm307_vm2 = vcmp.lt.s32.totalorder %v1326_v1, 192 }
   0xf   :  { %v1235_v22 = vld [vmem:[#allocation4 + $0x30] sm:$0xff]  ;;  %v1237_v23 = vld [vmem:[#allocation4 + $0x20] sm:$0xff] }
  0x10   :  { %v70_v3 = vld.sshfl [vmem:[#allocation1 + $0x8] sm:$0xff pattern:$0x75316420]  ;;  %v69_v13 = vld.sshfl [vmem:[#allocation1] sm:$0xff pattern:$0x75316420] }
  0x11   :  { %956 = vmatpush.msk.msra.mxu1 %vm98_vm0, %v70_v3  ;;  %947 = vmatpush.msk.msra.mxu0 %vm98_vm0, %v69_v13  ;;  %v1240_v24 = vld [vmem:[#allocation4 + $0x10] sm:$0xff]  ;;  %v1248_v26 = vld [vmem:[#allocation4] sm:$0xff] }
  0x12   :  { %957 = vmatmul.msk.f32.vlgmr.msra.gmra.mxu1 %vm73_vm1, %v1142_v2  ;;  %948 = vmatmul.msk.f32.vlgmr.msra.gmra.mxu0 %vm73_vm1, %v1142_v2  ;;  %v1260_v27 = vld [vmem:[%s1546_s0 + $0x38] sm:$0xff]  ;;  %v1296_v30 = vld [vmem:[%s1548_s2] sm:$0xf]  ;;  %s1089_s2 = smov 64  }
  0x13   :  { %375 = vmatpush.msrb.mxu1 %v1144_v4  ;;  %355 = vmatpush.msrb.mxu0 %v1210_v17  ;;  %v57_v31 = vperm.slane %v1296_v30, 1  ;;  %v56_v39 = vperm.slane %v1296_v30, 0  ;;  %v1003_v1 = vld [vmem:[%s1550_s4] ss:$0 sm:$0xff] }
  0x15   :  { %376 = vmatpush.msrb.mxu1 %v1149_v5  ;;  %356 = vmatpush.msrb.mxu0 %v1212_v18 }
  0x17   :  { %377 = vmatpush.msrb.mxu1 %v1152_v6  ;;  %357 = vmatpush.msrb.mxu0 %v1216_v19 }
  0x19   :  { %378 = vmatpush.msrb.mxu1 %v1155_v7  ;;  %358 = vmatpush.msrb.mxu0 %v1225_v21 }
  0x1a   :  { %958 = vmatmul.msk.f32.gmra.mxu1 %vm73_vm1, %v1160_v8  ;;  %949 = vmatmul.msk.f32.gmra.mxu0 %vm73_vm1, %v1160_v8 }
  0x1b   :  { %379 = vmatpush.msrb.mxu1 %v1163_v9  ;;  %359 = vmatpush.msrb.mxu0 %v1235_v22 }
  0x1d   :  { %380 = vmatpush.msrb.mxu1 %v1168_v10  ;;  %360 = vmatpush.msrb.mxu0 %v1237_v23 }
  0x1f   :  { %381 = vmatpush.msrb.mxu1 %v1179_v12  ;;  %361 = vmatpush.msrb.mxu0 %v1240_v24 }
  0x21   :  { %382 = vmatpush.msrb.mxu1 %v1192_v15  ;;  %362 = vmatpush.msrb.mxu0 %v1248_v26 }
  0x22   :  { %959 = vmatmul.msk.f32.gmra.mxu1 %vm73_vm1, %v1175_v11  ;;  %950 = vmatmul.msk.f32.gmra.mxu0 %vm73_vm1, %v1175_v11 }
  0x23   :  { %519 = vmatpush.msra.mxu1 %v1144_v4  ;;  %499 = vmatpush.msra.mxu0 %v1210_v17 }
  0x25   :  { %520 = vmatpush.msra.mxu1 %v1149_v5  ;;  %500 = vmatpush.msra.mxu0 %v1212_v18 }
  0x27   :  { %521 = vmatpush.msra.mxu1 %v1152_v6  ;;  %501 = vmatpush.msra.mxu0 %v1216_v19 }
  0x29   :  { %522 = vmatpush.msra.mxu1 %v1155_v7  ;;  %502 = vmatpush.msra.mxu0 %v1225_v21 }
  0x2a   :  { %960 = vmatmul.msk.f32.gmra.mxu1 %vm73_vm1, %v1188_v14  ;;  %951 = vmatmul.msk.f32.gmra.mxu0 %vm73_vm1, %v1188_v14 }
  0x2b   :  { %523 = vmatpush.msra.mxu1 %v1163_v9  ;;  %503 = vmatpush.msra.mxu0 %v1235_v22 }
  0x2d   :  { %524 = vmatpush.msra.mxu1 %v1168_v10  ;;  %504 = vmatpush.msra.mxu0 %v1237_v23 }
  0x2f   :  { %525 = vmatpush.msra.mxu1 %v1179_v12  ;;  %505 = vmatpush.msra.mxu0 %v1240_v24 }
  0x31   :  { %526 = vmatpush.msra.mxu1 %v1192_v15  ;;  %506 = vmatpush.msra.mxu0 %v1248_v26 }
  0x32   :  { %961 = vmatmul.msk.f32.gmra.mxu1 %vm73_vm1, %v1202_v16  ;;  %952 = vmatmul.msk.f32.gmra.mxu0 %vm73_vm1, %v1202_v16 }
  0x3a   :  { %962 = vmatmul.msk.f32.gmra.mxu1 %vm73_vm1, %v1221_v20  ;;  %953 = vmatmul.msk.f32.gmra.mxu0 %vm73_vm1, %v1221_v20 }
  0x42   :  { %963 = vmatmul.msk.f32.gmra.mxu1 %vm73_vm1, %v1245_v25  ;;  %954 = vmatmul.msk.f32.gmra.mxu0 %vm73_vm1, %v1245_v25 }
  0x4a   :  { %964 = vmatmul.msk.f32.gmra.mxu1 %vm73_vm1, %v1260_v27  ;;  %955 = vmatmul.msk.f32.gmra.mxu0 %vm73_vm1, %v1260_v27 }
  0x52   :  { %383 = vmatmul.f32.vlgmr.msrb.gmra.mxu1 %v1088_v28  ;;  %363 = vmatmul.f32.vlgmr.msrb.gmra.mxu0 %v1088_v28 }
  0x53   :  { %663 = vmatpush.msrb.mxu1 %v1144_v4  ;;  %643 = vmatpush.msrb.mxu0 %v1210_v17 }
  0x55   :  { %664 = vmatpush.msrb.mxu1 %v1149_v5  ;;  %644 = vmatpush.msrb.mxu0 %v1212_v18 }
  0x57   :  { %665 = vmatpush.msrb.mxu1 %v1152_v6  ;;  %645 = vmatpush.msrb.mxu0 %v1216_v19 }
  0x59   :  { %666 = vmatpush.msrb.mxu1 %v1155_v7  ;;  %646 = vmatpush.msrb.mxu0 %v1225_v21 }
  0x5b   :  { %667 = vmatpush.msrb.mxu1 %v1163_v9  ;;  %647 = vmatpush.msrb.mxu0 %v1235_v22 }
  0x5d   :  { %668 = vmatpush.msrb.mxu1 %v1168_v10  ;;  %648 = vmatpush.msrb.mxu0 %v1237_v23 }
  0x5f   :  { %669 = vmatpush.msrb.mxu1 %v1179_v12  ;;  %649 = vmatpush.msrb.mxu0 %v1240_v24 }
  0x61   :  { %670 = vmatpush.msrb.mxu1 %v1192_v15  ;;  %650 = vmatpush.msrb.mxu0 %v1248_v26 }
  0x8f   :  { %v165_v29 = vpop.f32.mrf.mxu1  ;;  %v124_v36 = vpop.f32.mrf.mxu0 }
  0x90   :  { %v166_v58 = vadd.f32 %v165_v29, %v57_v31 }
  0x97   :  { %v168_v32 = vpop.f32.mrf.mxu1  ;;  %v127_v40 = vpop.f32.mrf.mxu0 }
  0x98   :  { %v1299_v33 = vadd.f32 %v168_v32, %v57_v31  ;;  %v1306_v41 = vadd.f32 %v127_v40, %v56_v39 }
  0x9f   :  { %v171_v34 = vpop.f32.mrf.mxu1  ;;  %v130_v44 = vpop.f32.mrf.mxu0 }
  0xa0   :  { %v1301_v35 = vadd.f32 %v171_v34, %v57_v31  ;;  %v1310_v45 = vadd.f32 %v130_v44, %v56_v39 }
  0xa7   :  { %v174_v37 = vpop.f32.mrf.mxu1  ;;  %v133_v48 = vpop.f32.mrf.mxu0 }
  0xa8   :  { %v1303_v38 = vadd.f32 %v174_v37, %v57_v31  ;;  %v1314_v49 = vadd.f32 %v133_v48, %v56_v39 }
  0xaf   :  { %v177_v42 = vpop.f32.mrf.mxu1  ;;  %v136_v52 = vpop.f32.mrf.mxu0 }
  0xb0   :  { %v1308_v43 = vadd.f32 %v177_v42, %v57_v31  ;;  %v1318_v53 = vadd.f32 %v136_v52, %v56_v39  ;;  %v53_v52 = vld [vmem:[%s1547_s1 + $0x8] sm:$0xff] }
  0xb1   :  { %68 = vst [vmem:[#allocation1 + $0x10] ss:$2 sm:$0xff] %v53_v52 }
  0xb7   :  { %v180_v46 = vpop.f32.mrf.mxu1  ;;  %v139_v56 = vpop.f32.mrf.mxu0 }
  0xb8   :  { %v1312_v47 = vadd.f32 %v180_v46, %v57_v31  ;;  %v1322_v57 = vadd.f32 %v139_v56, %v56_v39  ;;  %v71_v56 = vld.sshfl [vmem:[#allocation1 + $0x10] sm:$0xff pattern:$0x75316420] }
  0xb9   :  { %965 = vmatpush.msk.msra.mxu2 %vm98_vm0, %v71_v56 }
  0xba   :  { %966 = vmatmul.msk.f32.vlgmr.msra.gmra.mxu2 %vm73_vm1, %v1142_v2 }
  0xbb   :  { %427 = vmatpush.msrb.mxu2 %v1210_v17 }
  0xbd   :  { %428 = vmatpush.msrb.mxu2 %v1212_v18 }
  0xbf   :  { %v183_v50 = vpop.f32.mrf.mxu1  ;;  %v142_v63 = vpop.f32.mrf.mxu0  ;;  %429 = vmatpush.msrb.mxu2 %v1216_v19 }
  0xc0   :  { %v1316_v51 = vadd.f32 %v183_v50, %v57_v31  ;;  %v1324_v0 = vadd.f32 %v142_v63, %v56_v39 }
  0xc1   :  { %430 = vmatpush.msrb.mxu2 %v1225_v21 }
  0xc2   :  { %967 = vmatmul.msk.f32.gmra.mxu2 %vm73_vm1, %v1160_v8 }
  0xc3   :  { %431 = vmatpush.msrb.mxu2 %v1235_v22 }
  0xc5   :  { %432 = vmatpush.msrb.mxu2 %v1237_v23 }
  0xc7   :  { %v186_v54 = vpop.f32.mrf.mxu1  ;;  %v145_v28 = vpop.f32.mrf.mxu0  ;;  %433 = vmatpush.msrb.mxu2 %v1240_v24 }
  0xc8   :  { %v1320_v55 = vadd.f32 %v186_v54, %v57_v31  ;;  %v1329_v34 = vadd.f32 %v145_v28, %v56_v39  ;;  %v125_v31 = vadd.f32 %v124_v36, %v56_v39  ;;  %v72_v54 = vld.sshfl [vmem:[#allocation1 + $0x18] sm:$0xff pattern:$0x75316420] }
  0xc9   :  { %974 = vmatpush.msk.msra.mxu3 %vm98_vm0, %v72_v54  ;;  %434 = vmatpush.msrb.mxu2 %v1248_v26 }
  0xca   :  { %975 = vmatmul.msk.f32.vlgmr.msra.gmra.mxu3 %vm73_vm1, %v1142_v2  ;;  %968 = vmatmul.msk.f32.gmra.mxu2 %vm73_vm1, %v1175_v11 }
  0xcb   :  { %447 = vmatpush.msrb.mxu3 %v1144_v4  ;;  %571 = vmatpush.msra.mxu2 %v1210_v17 }
  0xcd   :  { %448 = vmatpush.msrb.mxu3 %v1149_v5  ;;  %572 = vmatpush.msra.mxu2 %v1212_v18 }
  0xcf   :  { %v384_v60 = vpop.f32.mrf.mxu1  ;;  %v364_v37 = vpop.f32.mrf.mxu0  ;;  %449 = vmatpush.msrb.mxu3 %v1152_v6  ;;  %573 = vmatpush.msra.mxu2 %v1216_v19 }
  0xd0   :  { %v388_v61 = vadd.f32 %v384_v60, %v166_v58  ;;  %v387_v40 = vadd.f32 %v364_v37, %v125_v31 }
  0xd1   :  { %450 = vmatpush.msrb.mxu3 %v1155_v7  ;;  %574 = vmatpush.msra.mxu2 %v1225_v21 }
  0xd2   :  { %1005 = vtanh.f32 %v388_v61  ;;  %976 = vmatmul.msk.f32.gmra.mxu3 %vm73_vm1, %v1160_v8  ;;  %969 = vmatmul.msk.f32.gmra.mxu2 %vm73_vm1, %v1188_v14 }
  0xd3   :  { %1007 = vtanh.f32 %v387_v40  ;;  %451 = vmatpush.msrb.mxu3 %v1163_v9  ;;  %575 = vmatpush.msra.mxu2 %v1235_v22 }
  0xd5   :  { %452 = vmatpush.msrb.mxu3 %v1168_v10  ;;  %576 = vmatpush.msra.mxu2 %v1237_v23 }
  0xd7   :  { %453 = vmatpush.msrb.mxu3 %v1179_v12  ;;  %577 = vmatpush.msra.mxu2 %v1240_v24 }
  0xd8   :  { %v1006_v3 = vpop.eup %1005 }
  0xd9   :  { %v392_v13 = vmul.f32 0.5, %v1006_v3  ;;  %v1008_v42 = vpop.eup %1007  ;;  %454 = vmatpush.msrb.mxu3 %v1192_v15  ;;  %578 = vmatpush.msra.mxu2 %v1248_v26 }
  0xda   :  { %v391_v44 = vmul.f32 0.5, %v1008_v42  ;;  %977 = vmatmul.msk.f32.gmra.mxu3 %vm73_vm1, %v1175_v11  ;;  %970 = vmatmul.msk.f32.gmra.mxu2 %vm73_vm1, %v1202_v16 }
  0xdb   :  { %v394_v32 = vadd.f32 0.5, %v392_v13  ;;  %591 = vmatpush.msra.mxu3 %v1144_v4 }
  0xdc   :  { %v393_v46 = vadd.f32 0.5, %v391_v44 }
  0xdd   :  { %v1333_v29 = vsel %vm307_vm2, %v394_v32, %v1006_v3  ;;  %592 = vmatpush.msra.mxu3 %v1149_v5 }
  0xde   :  { %399 = vrot.lane.b32.xlu0 %v1333_v29, %s1089_s2  ;;  %v397_v2 = vmul.f32 0.0, %v393_v46 }
  0xdf   :  { %593 = vmatpush.msra.mxu3 %v1152_v6 }
  0xe1   :  { %594 = vmatpush.msra.mxu3 %v1155_v7 }
  0xe2   :  { %978 = vmatmul.msk.f32.gmra.mxu3 %vm73_vm1, %v1188_v14  ;;  %971 = vmatmul.msk.f32.gmra.mxu2 %vm73_vm1, %v1221_v20 }
  0xe3   :  { %595 = vmatpush.msra.mxu3 %v1163_v9 }
  0xe5   :  { %596 = vmatpush.msra.mxu3 %v1168_v10 }
  0xe7   :  { %597 = vmatpush.msra.mxu3 %v1179_v12 }
  0xe9   :  { %598 = vmatpush.msra.mxu3 %v1192_v15 }
  0xea   :  { %979 = vmatmul.msk.f32.gmra.mxu3 %vm73_vm1, %v1202_v16  ;;  %972 = vmatmul.msk.f32.gmra.mxu2 %vm73_vm1, %v1245_v25 }
  0xf2   :  { %980 = vmatmul.msk.f32.gmra.mxu3 %vm73_vm1, %v1221_v20  ;;  %973 = vmatmul.msk.f32.gmra.mxu2 %vm73_vm1, %v1260_v27 }
  0xfa   :  { %981 = vmatmul.msk.f32.gmra.mxu3 %vm73_vm1, %v1245_v25 }
 0x102   :  { %982 = vmatmul.msk.f32.gmra.mxu3 %vm73_vm1, %v1260_v27 }
 0x13d   :  { %v206_v14 = vpop.f32.mrf.mxu2 }
 0x145   :  { %v209_v59 = vpop.f32.mrf.mxu2 }
 0x14d   :  { %v247_v11 = vpop.f32.mrf.mxu3  ;;  %v212_v27 = vpop.f32.mrf.mxu2 }
 0x150   :  { %v400_v48 = vpop.permute.xlu0 %399 }
 0x151   :  { %v402_v50 = vmul.f32 %v400_v48, %v393_v46 }
 0x153   :  { %404 = vrot.lane.b32.xlu0 %v402_v50, %s1089_s2 }
 0x155   :  { %v250_v20 = vpop.f32.mrf.mxu3  ;;  %v215_v61 = vpop.f32.mrf.mxu2 }
 0x15d   :  { %v253_v25 = vpop.f32.mrf.mxu3  ;;  %v218_v63 = vpop.f32.mrf.mxu2 }
 0x165   :  { %v256_v60 = vpop.f32.mrf.mxu3  ;;  %v221_v13 = vpop.f32.mrf.mxu2 }
 0x16d   :  { %v259_v62 = vpop.f32.mrf.mxu3  ;;  %v224_v32 = vpop.f32.mrf.mxu2 }
 0x175   :  { %v262_v3 = vpop.f32.mrf.mxu3  ;;  %v1436_v48 = vpop.f32.mrf.mxu2 }
 0x17d   :  { %v265_v28 = vpop.f32.mrf.mxu3 }
 0x1c5   :  { %v405_v36 = vpop.permute.xlu0 %404 }
 0x1c6   :  { %v1363_v39 = vadd.f32 %v405_v36, %v397_v2 }
 0x1c8   :  { %1009 = vtanh.f32 %v1363_v39 }
 0x1ce   :  { %v1010_v8 = vpop.eup %1009 }
 0x1cf   :  { %410 = vrot.lane.b32.xlu1 %v1010_v8, %s1089_s2 }
 0x241   :  { %v411_v16 = vpop.permute.xlu1 %410 }
 0x242   :  { %v413_v58 = vmul.f32 %v411_v16, %v1333_v29  ;;  %v1430_v29 = vpop.f32.mrf.mxu3 }
 0x244   :  { %983 = vmatmul.msk.f32.vlgmr.msrb.gmra.mxu2 %vm343_vm3, %v413_v58  ;;  %984 = vmatmul.msk.f32.vlgmr.msrb.gmra.mxu3 %vm343_vm3, %v413_v58 }
 0x245   :  { %715 = vmatpush.msrb.mxu2 %v1210_v17  ;;  %735 = vmatpush.msrb.mxu3 %v1144_v4 }
 0x247   :  { %716 = vmatpush.msrb.mxu2 %v1212_v18  ;;  %736 = vmatpush.msrb.mxu3 %v1149_v5 }
 0x249   :  { %717 = vmatpush.msrb.mxu2 %v1216_v19  ;;  %737 = vmatpush.msrb.mxu3 %v1152_v6 }
 0x24b   :  { %718 = vmatpush.msrb.mxu2 %v1225_v21  ;;  %738 = vmatpush.msrb.mxu3 %v1155_v7 }
 0x24d   :  { %719 = vmatpush.msrb.mxu2 %v1235_v22  ;;  %739 = vmatpush.msrb.mxu3 %v1163_v9 }
 0x24f   :  { %720 = vmatpush.msrb.mxu2 %v1237_v23  ;;  %740 = vmatpush.msrb.mxu3 %v1168_v10 }
 0x251   :  { %721 = vmatpush.msrb.mxu2 %v1240_v24  ;;  %741 = vmatpush.msrb.mxu3 %v1179_v12 }
 0x253   :  { %722 = vmatpush.msrb.mxu2 %v1248_v26  ;;  %742 = vmatpush.msrb.mxu3 %v1192_v15 }
 0x2c7   :  { %v456_v31 = vpop.f32.mrf.mxu3  ;;  %v436_v50 = vpop.f32.mrf.mxu2 }
 0x2c8   :  { %v460_v37 = vadd.f32 %v456_v31, %v1299_v33  ;;  %v459_v52 = vadd.f32 %v436_v50, %v1306_v41 }
 0x2ca   :  { %1011 = vtanh.f32 %v460_v37 }
 0x2cb   :  { %1013 = vtanh.f32 %v459_v52 }
 0x2d0   :  { %v1012_v40 = vpop.eup %1011 }
 0x2d1   :  { %v464_v42 = vmul.f32 0.5, %v1012_v40  ;;  %v1014_v54 = vpop.eup %1013 }
 0x2d2   :  { %v463_v56 = vmul.f32 0.5, %v1014_v54 }
 0x2d3   :  { %v466_v44 = vadd.f32 0.5, %v464_v42 }
 0x2d4   :  { %v465_v2 = vadd.f32 0.5, %v463_v56 }
 0x2d5   :  { %v468_v46 = vsel %vm307_vm2, %v466_v44, %v1012_v40 }
 0x2d6   :  { %471 = vrot.lane.b32.xlu1 %v468_v46, %s1089_s2  ;;  %v469_v8 = vmul.f32 %v465_v2, %v1363_v39 }
 0x348   :  { %v472_v36 = vpop.permute.xlu1 %471 }
 0x349   :  { %v474_v33 = vmul.f32 %v472_v36, %v465_v2 }
 0x34b   :  { %476 = vrot.lane.b32.xlu2 %v474_v33, %s1089_s2 }
 0x3a5   :  { %v477_v11 = vpop.permute.xlu2 %476 }
 0x3a6   :  { %v479_v14 = vadd.f32 %v477_v11, %v469_v8 }
 0x3a8   :  { %1015 = vtanh.f32 %v479_v14 }
 0x3ae   :  { %v1016_v16 = vpop.eup %1015 }
 0x3af   :  { %482 = vrot.lane.b32.xlu2 %v1016_v16, %s1089_s2 }
 0x409   :  { %v483_v58 = vpop.permute.xlu2 %482 }
 0x40a   :  { %v485_v20 = vmul.f32 %v483_v58, %v468_v46 }
 0x40c   :  { %985 = vmatmul.msk.f32.vlgmr.msra.gmra.mxu0 %vm343_vm3, %v485_v20  ;;  %986 = vmatmul.msk.f32.vlgmr.msra.gmra.mxu1 %vm343_vm3, %v485_v20 }
 0x40d   :  { %787 = vmatpush.msra.mxu0 %v1210_v17  ;;  %807 = vmatpush.msra.mxu1 %v1144_v4 }
 0x40f   :  { %788 = vmatpush.msra.mxu0 %v1212_v18  ;;  %808 = vmatpush.msra.mxu1 %v1149_v5 }
 0x411   :  { %789 = vmatpush.msra.mxu0 %v1216_v19  ;;  %809 = vmatpush.msra.mxu1 %v1152_v6 }
 0x413   :  { %790 = vmatpush.msra.mxu0 %v1225_v21  ;;  %810 = vmatpush.msra.mxu1 %v1155_v7 }
 0x415   :  { %791 = vmatpush.msra.mxu0 %v1235_v22  ;;  %811 = vmatpush.msra.mxu1 %v1163_v9 }
 0x417   :  { %792 = vmatpush.msra.mxu0 %v1237_v23  ;;  %812 = vmatpush.msra.mxu1 %v1168_v10 }
 0x419   :  { %793 = vmatpush.msra.mxu0 %v1240_v24  ;;  %813 = vmatpush.msra.mxu1 %v1179_v12 }
 0x41b   :  { %794 = vmatpush.msra.mxu0 %v1248_v26  ;;  %814 = vmatpush.msra.mxu1 %v1192_v15 }
 0x489   :  { %v528_v41 = vpop.f32.mrf.mxu1  ;;  %v508_v61 = vpop.f32.mrf.mxu0 }
 0x48a   :  { %v532_v39 = vadd.f32 %v528_v41, %v1301_v35  ;;  %v531_v62 = vadd.f32 %v508_v61, %v1310_v45 }
 0x48c   :  { %1017 = vtanh.f32 %v532_v39 }
 0x48d   :  { %1019 = vtanh.f32 %v531_v62 }
 0x492   :  { %v1018_v59 = vpop.eup %1017 }
 0x493   :  { %v536_v25 = vmul.f32 0.5, %v1018_v59  ;;  %v1020_v63 = vpop.eup %1019 }
 0x494   :  { %v535_v3 = vmul.f32 0.5, %v1020_v63 }
 0x495   :  { %v538_v27 = vadd.f32 0.5, %v536_v25 }
 0x496   :  { %v537_v13 = vadd.f32 0.5, %v535_v3 }
 0x497   :  { %v540_v60 = vsel %vm307_vm2, %v538_v27, %v1018_v59 }
 0x498   :  { %543 = vrot.lane.b32.xlu0 %v540_v60, %s1089_s2  ;;  %v541_v35 = vmul.f32 %v537_v13, %v479_v14 }
 0x50a   :  { %v544_v28 = vpop.permute.xlu0 %543 }
 0x50b   :  { %v546_v32 = vmul.f32 %v544_v28, %v537_v13 }
 0x50d   :  { %548 = vrot.lane.b32.xlu1 %v546_v32, %s1089_s2 }
 0x57f   :  { %v549_v31 = vpop.permute.xlu1 %548 }
 0x580   :  { %v551_v37 = vadd.f32 %v549_v31, %v541_v35 }
 0x582   :  { %1021 = vtanh.f32 %v551_v37 }
 0x588   :  { %v1022_v40 = vpop.eup %1021 }
 0x589   :  { %554 = vrot.lane.b32.xlu2 %v1022_v40, %s1089_s2 }
 0x5e3   :  { %v555_v42 = vpop.permute.xlu2 %554 }
 0x5e4   :  { %v557_v44 = vmul.f32 %v555_v42, %v540_v60 }
 0x5e6   :  { %987 = vmatmul.msk.f32.vlgmr.msra.gmra.mxu2 %vm343_vm3, %v557_v44  ;;  %988 = vmatmul.msk.f32.vlgmr.msra.gmra.mxu3 %vm343_vm3, %v557_v44 }
 0x5e7   :  { %859 = vmatpush.msra.mxu2 %v1210_v17  ;;  %879 = vmatpush.msra.mxu3 %v1144_v4 }
 0x5e9   :  { %860 = vmatpush.msra.mxu2 %v1212_v18  ;;  %880 = vmatpush.msra.mxu3 %v1149_v5 }
 0x5eb   :  { %861 = vmatpush.msra.mxu2 %v1216_v19  ;;  %881 = vmatpush.msra.mxu3 %v1152_v6 }
 0x5ed   :  { %862 = vmatpush.msra.mxu2 %v1225_v21  ;;  %882 = vmatpush.msra.mxu3 %v1155_v7 }
 0x5ef   :  { %863 = vmatpush.msra.mxu2 %v1235_v22  ;;  %883 = vmatpush.msra.mxu3 %v1163_v9 }
 0x5f1   :  { %864 = vmatpush.msra.mxu2 %v1237_v23  ;;  %884 = vmatpush.msra.mxu3 %v1168_v10 }
 0x5f3   :  { %865 = vmatpush.msra.mxu2 %v1240_v24  ;;  %885 = vmatpush.msra.mxu3 %v1179_v12 }
 0x5f5   :  { %866 = vmatpush.msra.mxu2 %v1248_v26  ;;  %886 = vmatpush.msra.mxu3 %v1192_v15 }
 0x669   :  { %v600_v4 = vpop.f32.mrf.mxu3  ;;  %v580_v10 = vpop.f32.mrf.mxu2 }
 0x66a   :  { %v604_v5 = vadd.f32 %v600_v4, %v1303_v38  ;;  %v603_v18 = vadd.f32 %v580_v10, %v1314_v49 }
 0x66c   :  { %1023 = vtanh.f32 %v604_v5 }
 0x66d   :  { %1025 = vtanh.f32 %v603_v18 }
 0x672   :  { %v1024_v6 = vpop.eup %1023 }
 0x673   :  { %v608_v7 = vmul.f32 0.5, %v1024_v6  ;;  %v1026_v12 = vpop.eup %1025 }
 0x674   :  { %v607_v19 = vmul.f32 0.5, %v1026_v12 }
 0x675   :  { %v610_v17 = vadd.f32 0.5, %v608_v7 }
 0x676   :  { %v609_v21 = vadd.f32 0.5, %v607_v19 }
 0x677   :  { %v612_v9 = vsel %vm307_vm2, %v610_v17, %v1024_v6 }
 0x678   :  { %615 = vrot.lane.b32.xlu0 %v612_v9, %s1089_s2  ;;  %v613_v23 = vmul.f32 %v609_v21, %v551_v37 }
 0x6ea   :  { %v616_v15 = vpop.permute.xlu0 %615 }
 0x6eb   :  { %v618_v22 = vmul.f32 %v616_v15, %v609_v21 }
 0x6ed   :  { %620 = vrot.lane.b32.xlu1 %v618_v22, %s1089_s2 }
 0x75f   :  { %v621_v24 = vpop.permute.xlu1 %620 }
 0x760   :  { %v623_v26 = vadd.f32 %v621_v24, %v613_v23 }
 0x762   :  { %1027 = vtanh.f32 %v623_v26 }
 0x768   :  { %v1028_v38 = vpop.eup %1027 }
 0x769   :  { %626 = vrot.lane.b32.xlu2 %v1028_v38, %s1089_s2 }
 0x7c3   :  { %v627_v45 = vpop.permute.xlu2 %626 }
 0x7c4   :  { %v629_v46 = vmul.f32 %v627_v45, %v612_v9 }
 0x7c6   :  { %989 = vmatmul.msk.f32.vlgmr.msrb.gmra.mxu0 %vm343_vm3, %v629_v46  ;;  %990 = vmatmul.msk.f32.vlgmr.msrb.gmra.mxu1 %vm343_vm3, %v629_v46 }
 0x843   :  { %v672_v49 = vpop.f32.mrf.mxu1  ;;  %v652_v36 = vpop.f32.mrf.mxu0 }
 0x844   :  { %v676_v50 = vadd.f32 %v672_v49, %v1308_v43  ;;  %v675_v33 = vadd.f32 %v652_v36, %v1318_v53 }
 0x846   :  { %1029 = vtanh.f32 %v676_v50 }
 0x847   :  { %1031 = vtanh.f32 %v675_v33 }
 0x84c   :  { %v1030_v52 = vpop.eup %1029 }
 0x84d   :  { %v680_v54 = vmul.f32 0.5, %v1030_v52  ;;  %v1032_v8 = vpop.eup %1031 }
 0x84e   :  { %v679_v11 = vmul.f32 0.5, %v1032_v8 }
 0x84f   :  { %v682_v56 = vadd.f32 0.5, %v680_v54  ;;  %v58_v54 = vperm.slane %v1296_v30, 2 }
 0x850   :  { %v681_v14 = vadd.f32 0.5, %v679_v11 }
 0x851   :  { %v684_v2 = vsel %vm307_vm2, %v682_v56, %v1030_v52 }
 0x852   :  { %687 = vrot.lane.b32.xlu0 %v684_v2, %s1089_s2  ;;  %v685_v43 = vmul.f32 %v681_v14, %v623_v26 }
 0x8c4   :  { %v688_v16 = vpop.permute.xlu0 %687 }
 0x8c5   :  { %v690_v58 = vmul.f32 %v688_v16, %v681_v14  ;;  %v1002_v16 = vld [vmem:[%s1551_s5] ss:$0 sm:$0xff] }
 0x8c7   :  { %692 = vrot.lane.b32.xlu1 %v690_v58, %s1089_s2 }
 0x939   :  { %v693_v20 = vpop.permute.xlu1 %692 }
 0x93a   :  { %v695_v41 = vadd.f32 %v693_v20, %v685_v43 }
 0x93c   :  { %1033 = vtanh.f32 %v695_v41 }
 0x942   :  { %v1034_v39 = vpop.eup %1033 }
 0x943   :  { %698 = vrot.lane.b32.xlu2 %v1034_v39, %s1089_s2 }
 0x99d   :  { %v699_v59 = vpop.permute.xlu2 %698 }
 0x99e   :  { %v701_v25 = vmul.f32 %v699_v59, %v684_v2 }
 0x9a0   :  { %991 = vmatmul.msk.f32.vlgmr.msrb.gmra.mxu2 %vm343_vm3, %v701_v25  ;;  %992 = vmatmul.msk.f32.vlgmr.msrb.gmra.mxu3 %vm343_vm3, %v701_v25 }
 0xa23   :  { %v744_v53 = vpop.f32.mrf.mxu3  ;;  %v724_v3 = vpop.f32.mrf.mxu2 }
 0xa24   :  { %v748_v27 = vadd.f32 %v744_v53, %v1312_v47  ;;  %v747_v13 = vadd.f32 %v724_v3, %v1322_v57 }
 0xa26   :  { %1035 = vtanh.f32 %v748_v27 }
 0xa27   :  { %1037 = vtanh.f32 %v747_v13 }
 0xa2c   :  { %v1036_v60 = vpop.eup %1035 }
 0xa2d   :  { %v752_v61 = vmul.f32 0.5, %v1036_v60  ;;  %v1038_v28 = vpop.eup %1037 }
 0xa2e   :  { %v751_v32 = vmul.f32 0.5, %v1038_v28 }
 0xa2f   :  { %v754_v62 = vadd.f32 0.5, %v752_v61 }
 0xa30   :  { %v753_v35 = vadd.f32 0.5, %v751_v32 }
 0xa31   :  { %v756_v63 = vsel %vm307_vm2, %v754_v62, %v1036_v60 }
 0xa32   :  { %759 = vrot.lane.b32.xlu0 %v756_v63, %s1089_s2  ;;  %v757_v47 = vmul.f32 %v753_v35, %v695_v41 }
 0xaa4   :  { %v760_v31 = vpop.permute.xlu0 %759 }
 0xaa5   :  { %v762_v37 = vmul.f32 %v760_v31, %v753_v35 }
 0xaa7   :  { %764 = vrot.lane.b32.xlu1 %v762_v37, %s1089_s2 }
 0xb19   :  { %v765_v40 = vpop.permute.xlu1 %764 }
 0xb1a   :  { %v767_v42 = vadd.f32 %v765_v40, %v757_v47  ;;  %v1004_v40 = vld [vmem:[#allocation3] ss:$0 sm:$0xff] }
 0xb1c   :  { %1039 = vtanh.f32 %v767_v42 }
 0xb22   :  { %v1040_v44 = vpop.eup %1039 }
 0xb23   :  { %770 = vrot.lane.b32.xlu2 %v1040_v44, %s1089_s2 }
 0xb7d   :  { %v771_v4 = vpop.permute.xlu2 %770 }
 0xb7e   :  { %v773_v5 = vmul.f32 %v771_v4, %v756_v63 }
 0xb80   :  { %993 = vmatmul.msk.f32.vlgmr.msra.gmra.mxu0 %vm343_vm3, %v773_v5  ;;  %994 = vmatmul.msk.f32.vlgmr.msra.gmra.mxu1 %vm343_vm3, %v773_v5 }
 0xbfd   :  { %v816_v57 = vpop.f32.mrf.mxu1  ;;  %v796_v18 = vpop.f32.mrf.mxu0 }
 0xbfe   :  { %v820_v6 = vadd.f32 %v816_v57, %v1316_v51  ;;  %v819_v12 = vadd.f32 %v796_v18, %v1324_v0  ;;  %v59_v51 = vperm.slane %v1296_v30, 3 }
 0xc00   :  { %1041 = vtanh.f32 %v820_v6  ;;  %v269_v24 = vadd.f32 %v1430_v29, %v59_v51  ;;  %v228_v29 = vadd.f32 %v1436_v48, %v58_v54 }
 0xc01   :  { %1043 = vtanh.f32 %v819_v12 }
 0xc02   :  { %1045 = vtanh.f32 %v269_v24 }
 0xc06   :  { %v1042_v7 = vpop.eup %1041 }
 0xc07   :  { %v824_v17 = vmul.f32 0.5, %v1042_v7  ;;  %v1044_v19 = vpop.eup %1043 }
 0xc08   :  { %v823_v21 = vmul.f32 0.5, %v1044_v19  ;;  %v1046_v46 = vpop.eup %1045 }
 0xc09   :  { %v826_v9 = vadd.f32 0.5, %v824_v17  ;;  %v313_v0 = vmul.f32 0.5, %v1046_v46 }
 0xc0a   :  { %v825_v15 = vadd.f32 0.5, %v823_v21 }
 0xc0b   :  { %v828_v10 = vsel %vm307_vm2, %v826_v9, %v1042_v7  ;;  %v315_v50 = vadd.f32 0.5, %v313_v0 }
 0xc0c   :  { %831 = vrot.lane.b32.xlu0 %v828_v10, %s1089_s2  ;;  %v829_v26 = vmul.f32 %v825_v15, %v767_v42 }
 0xc0d   :  { %v317_v52 = vsel %vm307_vm2, %v315_v50, %v1046_v46 }
 0xc7e   :  { %v832_v22 = vpop.permute.xlu0 %831 }
 0xc7f   :  { %v834_v23 = vmul.f32 %v832_v22, %v825_v15 }
 0xc81   :  { %836 = vrot.lane.b32.xlu1 %v834_v23, %s1089_s2 }
 0xcf3   :  { %v837_v38 = vpop.permute.xlu1 %836 }
 0xcf4   :  { %v839_v45 = vadd.f32 %v837_v38, %v829_v26 }
 0xcf6   :  { %1047 = vtanh.f32 %v839_v45 }
 0xcf7   :  { %1049 = vtanh.f32 %v228_v29 }
 0xcfc   :  { %v1048_v49 = vpop.eup %1047 }
 0xcfd   :  { %842 = vrot.lane.b32.xlu2 %v1048_v49, %s1089_s2  ;;  %v1050_v56 = vpop.eup %1049 }
 0xcfe   :  { %v312_v33 = vmul.f32 0.5, %v1050_v56 }
 0xd00   :  { %v314_v8 = vadd.f32 0.5, %v312_v33 }
 0xd05   :  { %319 = vrot.lane.b32.xlu2 %v317_v52, %s1089_s2 }
 0xd57   :  { %v843_v2 = vpop.permute.xlu2 %842 }
 0xd58   :  { %v845_v36 = vmul.f32 %v843_v2, %v828_v10 }
 0xd5a   :  { %995 = vmatmul.msk.f32.vlgmr.msra.gmra.mxu2 %vm343_vm3, %v845_v36  ;;  %996 = vmatmul.msk.f32.vlgmr.msra.gmra.mxu3 %vm343_vm3, %v845_v36 }
 0xd5f   :  { %v320_v11 = vpop.permute.xlu2 %319 }
 0xd60   :  { %v322_v14 = vmul.f32 %v320_v11, %v314_v8 }
 0xd62   :  { %1051 = vtanh.f32 %v322_v14 }
 0xd68   :  { %v1052_v30 = vpop.eup %1051 }
 0xd69   :  { %v324_v58 = vmul.f32 %v1052_v30, %v317_v52 }
 0xd6b   :  { %v930_v48 = vmul.f32 %v1002_v16, %v324_v58 }
 0xd6d   :  { %v931_v43 = vsel %vm343_vm3, %v930_v48, 0.0 }
 0xd6e   :  { %932 = vadd.xlane.f32.xlu2 %v931_v43 }
 0xddd   :  { %v888_v20 = vpop.f32.mrf.mxu3  ;;  %v868_v27 = vpop.f32.mrf.mxu2 }
 0xdde   :  { %v892_v41 = vadd.f32 %v888_v20, %v1320_v55  ;;  %v891_v60 = vadd.f32 %v868_v27, %v1329_v34 }
 0xde0   :  { %1053 = vtanh.f32 %v892_v41 }
 0xde1   :  { %1055 = vtanh.f32 %v891_v60  ;;  %v933_v42 = vpop.xlane.xlu2 %932 }
 0xde6   :  { %v1054_v39 = vpop.eup %1053 }
 0xde7   :  { %v896_v59 = vmul.f32 0.5, %v1054_v39  ;;  %v1056_v61 = vpop.eup %1055 }
 0xde8   :  { %v895_v62 = vmul.f32 0.5, %v1056_v61 }
 0xde9   :  { %v898_v25 = vadd.f32 0.5, %v896_v59 }
 0xdea   :  { %v897_v63 = vadd.f32 0.5, %v895_v62 }
 0xdeb   :  { %v900_v53 = vsel %vm307_vm2, %v898_v25, %v1054_v39 }
 0xdec   :  { %903 = vrot.lane.b32.xlu0 %v900_v53, %s1089_s2  ;;  %v901_v55 = vmul.f32 %v897_v63, %v839_v45 }
 0xe5e   :  { %v904_v3 = vpop.permute.xlu0 %903 }
 0xe5f   :  { %v906_v13 = vmul.f32 %v904_v3, %v897_v63 }
 0xe61   :  { %908 = vrot.lane.b32.xlu1 %v906_v13, %s1089_s2 }
 0xed3   :  { %v909_v28 = vpop.permute.xlu1 %908 }
 0xed4   :  { %v911_v32 = vadd.f32 %v909_v28, %v901_v55 }
 0xed6   :  { %1057 = vtanh.f32 %v911_v32 }
 0xedc   :  { %v1058_v35 = vpop.eup %1057 }
 0xedd   :  { %914 = vrot.lane.b32.xlu0 %v1058_v35, %s1089_s2 }
 0xf4f   :  { %v915_v34 = vpop.permute.xlu0 %914 }
 0xf50   :  { %v917_v31 = vmul.f32 %v915_v34, %v900_v53 }
 0xf52   :  { %v922_v37 = vmul.f32 %v1003_v1, %v917_v31 }
 0xf54   :  { %v923_v47 = vsel %vm343_vm3, %v922_v37, 0.0 }
 0xf55   :  { %924 = vadd.xlane.f32.xlu1 %v923_v47 }
 0xfc8   :  { %v925_v44 = vpop.xlane.xlu1 %924 }
 0xfc9   :  { %v934_v4 = vadd.f32 %v933_v42, %v925_v44 }
 0xfcb   :  { %v939_v5 = vadd.f32 %v1004_v40, %v934_v4 }
 0xfcd   :  { %941 = vst.msk [vmem:[%s1553_s7] sm:$0xff] %vm940_vm4, %v939_v5 }
 0xfce   :  { %946 = vsyncpa [#allocation5], 1 }

</bundles_post_ra>
